<compile_context>
chip_gen: v5e
topology: v5e:2x2
jax: 0.10.0
libtpu: 0.0.40
codegen_flags: <defaults>
</compile_context>

<pallas_src>
import functools

import jax
import jax.numpy as jnp
from jax.experimental import pallas as pl
from jax.experimental.pallas import tpu as pltpu


# ----------------------------------------------------------------------------
# Kernels
# ----------------------------------------------------------------------------
def _ffn_kernel_resident(x_ref, w1_ref, b1_ref, w2_ref, b2_ref, o_ref):
    """Whole FFN for one row tile; W1/W2 are VMEM-resident (constant index)."""
    x = x_ref[...]                                                # (tm, H)
    h = jnp.dot(x, w1_ref[...], preferred_element_type=jnp.float32)
    h = jnp.maximum(h + b1_ref[...].astype(jnp.float32), 0.0)    # (tm, 4H) f32
    y = jnp.dot(h.astype(w2_ref.dtype), w2_ref[...],
                preferred_element_type=jnp.float32)               # (tm, H) f32
    y = y + b2_ref[...].astype(jnp.float32) + x.astype(jnp.float32)
    o_ref[...] = y.astype(o_ref.dtype)


def _ffn_kernel_streamed(x_ref, w1_ref, b1_ref, w2_ref, b2_ref, o_ref, acc_ref):
    """Grid point (i, j): row tile i, 4H-slab j.

    y[i] = sum_j relu(x[i] @ W1[:, j] + b1[j]) @ W2[j, :]  (+ b2 + x[i] at last j)
    """
    j = pl.program_id(1)

    x = x_ref[...]                                                # (tm, H)
    h = jnp.dot(x, w1_ref[...], preferred_element_type=jnp.float32)
    h = jnp.maximum(h + b1_ref[...].astype(jnp.float32), 0.0)    # (tm, tn) f32
    part = jnp.dot(h.astype(w2_ref.dtype), w2_ref[...],
                   preferred_element_type=jnp.float32)            # (tm, H) f32

    @pl.when(j == 0)
    def _():
        acc_ref[...] = part            # first slab: write directly, no zero-init

    @pl.when(j > 0)
    def _():
        acc_ref[...] += part

    @pl.when(j == pl.num_programs(1) - 1)
    def _():
        y = acc_ref[...] + b2_ref[...].astype(jnp.float32) + x.astype(jnp.float32)
        o_ref[...] = y.astype(o_ref.dtype)


# ----------------------------------------------------------------------------
# Planning helpers
# ----------------------------------------------------------------------------
_ROW_ALIGN = 256        # multiple of 128 (v5e MXU) and 256 (v6e/v7x MXU)


def _round_up(x, m):
    return ((x + m - 1) // m) * m


def _vmem_capacity_bytes():
    try:
        cap = int(pltpu.get_tpu_info().vmem_capacity_bytes)
        if cap > 0:
            return cap
    except Exception:
        pass
    return 64 << 20     # conservative fallback (v7x per-TensorCore VMEM)


def _pick_tn(h4, requested):
    """Largest multiple of 128 that divides h4 and is <= requested; h4 if none."""
    if h4 % 128 != 0:
        return h4
    tn = min((requested // 128) * 128, h4)
    while tn >= 128 and h4 % tn != 0:
        tn -= 128
    return tn if tn >= 128 else h4


def _resident_footprint(tm, hidden, h4, isz, out_isz):
    weights = (hidden * h4 + h4 * hidden + h4 + hidden) * isz
    act = tm * hidden * (isz + out_isz)
    temps = tm * h4 * (4 + isz) + tm * hidden * 4     # h f32 + h cast + y f32
    return 2 * weights + 2 * act + temps              # 2x: pipeline buffers


def _streamed_footprint(tm, tn, hidden, isz, out_isz):
    blocks = (tm * hidden * isz          # x tile
              + hidden * tn * isz        # W1 slab
              + tn * isz                 # b1 slab
              + tn * hidden * isz        # W2 slab
              + hidden * isz             # b2
              + tm * hidden * out_isz)   # out tile
    temps = tm * tn * (4 + isz)          # h f32 + h cast
    acc = tm * hidden * 4                # f32 accumulator scratch
    return 2 * blocks + acc + temps


# ----------------------------------------------------------------------------
# Public wrapper
# ----------------------------------------------------------------------------
@functools.partial(
    jax.jit, static_argnames=("tm", "tn", "compute_dtype", "weights_resident"))
def classic_feed_forward(x, w1, b1, w2, b2, *, tm=512, tn=None,
                         compute_dtype=jnp.bfloat16, weights_resident=None):
    """x: [batch, seq, hidden]; w1: [H, 4H]; b1: [1, 4H]; w2: [4H, H]; b2: [1, H]."""
    batch, seq, hidden = x.shape
    h4 = w1.shape[1]
    n = batch * seq
    out_dtype = x.dtype

    # bf16 operands by default (full-rate MXU, half the weight bytes); the
    # reduction / bias / ReLU / residual math stays in f32 inside the kernel.
    cdt = jnp.dtype(compute_dtype)
    xc = x.reshape(n, hidden).astype(cdt)
    w1c, w2c = w1.astype(cdt), w2.astype(cdt)
    b1f, b2f = b1.astype(jnp.float32), b2.astype(jnp.float32)

    isz = cdt.itemsize
    out_isz = jnp.dtype(out_dtype).itemsize

    cap = _vmem_capacity_bytes()
    budget = max(cap - (8 << 20), 16 << 20)      # headroom for compiler scratch

    # ---- row tile ----------------------------------------------------------
    n_al = _round_up(n, _ROW_ALIGN)
    tm0 = min(max(_ROW_ALIGN, (tm // _ROW_ALIGN) * _ROW_ALIGN), n_al)
    if n_al >= 2 * _ROW_ALIGN:
        # Guarantee >= 2 row tiles so both v7x TensorCores get work.
        tm0 = min(tm0, _round_up(n_al // 2, _ROW_ALIGN))

    # ---- plan selection ----------------------------------------------------
    plan = None
    if weights_resident is not False:
        tm_r = tm0
        while tm_r >= _ROW_ALIGN:
            if (weights_resident is True
                    or _resident_footprint(tm_r, hidden, h4, isz, out_isz) <= budget):
                plan = ("resident", tm_r, h4)
                break
            tm_r -= _ROW_ALIGN
    if plan is None:
        tn0 = _pick_tn(h4, tn if tn is not None
                       else (512 if budget >= (96 << 20) else 256))
        tm_s, tn_s = tm0, tn0
        while _streamed_footprint(tm_s, tn_s, hidden, isz, out_isz) > budget:
            # Shrink tn first (per-step slab size only, not total weight traffic),
            # then tm (the bandwidth lever), never below one 256-row tile.
            if h4 % 128 == 0 and tn_s > 128:
                nxt = _pick_tn(h4, tn_s - 128)
                if nxt < tn_s:
                    tn_s = nxt
                    continue
            if tm_s > _ROW_ALIGN:
                tm_s -= _ROW_ALIGN
                continue
            break
        plan = ("streamed", tm_s, tn_s)

    mode, tm_eff, tn_eff = plan
    n_pad = _round_up(n, tm_eff)
    if n_pad != n:
        xc = jnp.pad(xc, ((0, n_pad - n), (0, 0)))

    if mode == "resident":
        footprint = _resident_footprint(tm_eff, hidden, h4, isz, out_isz)
        grid_spec = pltpu.PrefetchScalarGridSpec(
            num_scalar_prefetch=0,
            grid=(n_pad // tm_eff,),
            in_specs=[
                pl.BlockSpec((tm_eff, hidden), lambda i: (i, 0)),   # x rows
                pl.BlockSpec((hidden, h4),     lambda i: (0, 0)),   # W1 resident
                pl.BlockSpec((1, h4),          lambda i: (0, 0)),   # b1
                pl.BlockSpec((h4, hidden),     lambda i: (0, 0)),   # W2 resident
                pl.BlockSpec((1, hidden),      lambda i: (0, 0)),   # b2
            ],
            out_specs=pl.BlockSpec((tm_eff, hidden), lambda i: (i, 0)),
        )
        kernel = _ffn_kernel_resident
        semantics = ("parallel",)
    else:
        footprint = _streamed_footprint(tm_eff, tn_eff, hidden, isz, out_isz)
        grid_spec = pltpu.PrefetchScalarGridSpec(
            num_scalar_prefetch=0,
            grid=(n_pad // tm_eff, h4 // tn_eff),
            in_specs=[
                pl.BlockSpec((tm_eff, hidden), lambda i, j: (i, 0)),  # x rows
                pl.BlockSpec((hidden, tn_eff), lambda i, j: (0, j)),  # W1 slab
                pl.BlockSpec((1, tn_eff),      lambda i, j: (0, j)),  # b1 slab
                pl.BlockSpec((tn_eff, hidden), lambda i, j: (j, 0)),  # W2 slab
                pl.BlockSpec((1, hidden),      lambda i, j: (0, 0)),  # b2
            ],
            out_specs=pl.BlockSpec((tm_eff, hidden), lambda i, j: (i, 0)),
            scratch_shapes=[pltpu.VMEM((tm_eff, hidden), jnp.float32)],
        )
        kernel = _ffn_kernel_streamed
        semantics = ("parallel", "arbitrary")

    # Never request more scoped VMEM than the chip physically has.
    vmem_limit = int(min(cap - (1 << 20), max(footprint + (4 << 20), 16 << 20)))

    out = pl.pallas_call(
        kernel,
        out_shape=jax.ShapeDtypeStruct((n_pad, hidden), out_dtype),
        grid_spec=grid_spec,
        compiler_params=pltpu.CompilerParams(
            dimension_semantics=semantics,
            vmem_limit_bytes=vmem_limit,
        ),
    )(xc, w1c, b1f, w2c, b2f)

    return out[:n].reshape(batch, seq, hidden)


# ----------------------------------------------------------------------------
# Parameter init (torch.nn.Linear default) and pure-JAX reference
# ----------------------------------------------------------------------------
def init_params(key, hidden_units, dtype=jnp.float32):
    """torch.nn.Linear default init (U[-1/sqrt(fan_in), 1/sqrt(fan_in)])."""
    k1, k2, k3, k4 = jax.random.split(key, 4)
    h, h4 = hidden_units, 4 * hidden_units
    bound1 = 1.0 / float(jnp.sqrt(jnp.float32(h)))
    bound2 = 1.0 / float(jnp.sqrt(jnp.float32(h4)))
    # Stored as [in, out] (torch weight transposed) for row-major MXU matmuls.
    w1 = jax.random.uniform(k1, (h, h4), dtype, -bound1, bound1)
    b1 = jax.random.uniform(k2, (1, h4), dtype, -bound1, bound1)
    w2 = jax.random.uniform(k3, (h4, h), dtype, -bound2, bound2)
    b2 = jax.random.uniform(k4, (1, h), dtype, -bound2, bound2)
    return w1, b1, w2, b2


def _reference(x, w1, b1, w2, b2):
    x32 = x.astype(jnp.float32)
    h = jnp.maximum(x32 @ w1.astype(jnp.float32) + b1.astype(jnp.float32), 0.0)
    return h @ w2.astype(jnp.float32) + b2.astype(jnp.float32) + x32


if __name__ == "__main__":
    key = jax.random.PRNGKey(0)

    # ---- Check 1: small f32 shapes, f32 compute (weights-resident path) -----
    batch, seq, hidden = 2, 8, 32
    kx, kp, krest = jax.random.split(key, 3)
    x = jax.random.normal(kx, (batch, seq, hidden), dtype=jnp.float32)
    w1, b1, w2, b2 = init_params(kp, hidden, dtype=jnp.float32)

    y = jax.block_until_ready(
        classic_feed_forward(x, w1, b1, w2, b2, compute_dtype=jnp.float32))
    ref = _reference(x.reshape(-1, hidden), w1, b1, w2, b2).reshape(x.shape)
    assert jnp.allclose(y, ref, atol=1e-5, rtol=1e-5), "f32 mismatch vs reference"

    # ---- Check 2: bf16 default path, multiple row tiles (resident) ----------
    batch2, seq2, hidden2 = 4, 128, 128      # N = 512 -> 2 row tiles of 256
    kx2, kp2, kx3 = jax.random.split(krest, 3)
    xb = jax.random.normal(kx2, (batch2, seq2, hidden2),
                           dtype=jnp.float32).astype(jnp.bfloat16)
    wp = init_params(kp2, hidden2, dtype=jnp.bfloat16)

    yb = jax.block_until_ready(classic_feed_forward(xb, *wp))
    refb = _reference(xb.reshape(-1, hidden2), *wp).reshape(xb.shape)
    err = jnp.max(jnp.abs(yb.astype(jnp.float32) - refb))
    assert err < 0.1, f"bf16 (resident) mismatch vs reference (max abs err {err})"

    # ---- Check 3: force the streamed 2-D grid (exercises the accumulator) ---
    yb2 = jax.block_until_ready(
        classic_feed_forward(xb, *wp, tn=128, weights_resident=False))
    err2 = jnp.max(jnp.abs(yb2.astype(jnp.float32) - refb))
    assert err2 < 0.1, f"bf16 (streamed) mismatch vs reference (max abs err {err2})"

    print("KERNEL_OK")
</pallas_src>

<mosaic_0001>
module attributes {stable_mosaic.version = 11 : i64} {
  func.func @_ffn_kernel_resident(%arg0: i32, %arg1: memref<256x32xf32, #tpu.memory_space<vmem>>, %arg2: memref<32x128xf32, #tpu.memory_space<vmem>>, %arg3: memref<1x128xf32, #tpu.memory_space<vmem>>, %arg4: memref<128x32xf32, #tpu.memory_space<vmem>>, %arg5: memref<1x32xf32, #tpu.memory_space<vmem>>, %arg6: memref<256x32xf32, #tpu.memory_space<vmem>>) attributes {dimension_semantics = [#tpu.dimension_semantics<parallel>], iteration_bounds = array<i64: 1>, scalar_prefetch = 0 : i64, scratch_operands = 0 : i64, tpu.core_type = #tpu.core_type<tc>, window_params = [{transform_indices = @transform_0, window_bounds = array<i64: 256, 32>}, {pipeline_mode = #tpu.pipeline_mode<synchronous>, transform_indices = @transform_1, window_bounds = array<i64: 32, 128>}, {pipeline_mode = #tpu.pipeline_mode<synchronous>, transform_indices = @transform_2, window_bounds = array<i64: 1, 128>}, {pipeline_mode = #tpu.pipeline_mode<synchronous>, transform_indices = @transform_3, window_bounds = array<i64: 128, 32>}, {pipeline_mode = #tpu.pipeline_mode<synchronous>, transform_indices = @transform_4, window_bounds = array<i64: 1, 32>}, {transform_indices = @transform_5, window_bounds = array<i64: 256, 32>}]} {
    %c0 = arith.constant 0 : index
    %c0_0 = arith.constant 0 : index
    %0 = vector.load %arg1[%c0, %c0_0] : memref<256x32xf32, #tpu.memory_space<vmem>>, vector<256x32xf32>
    %c0_1 = arith.constant 0 : index
    %c0_2 = arith.constant 0 : index
    %1 = vector.load %arg2[%c0_1, %c0_2] : memref<32x128xf32, #tpu.memory_space<vmem>>, vector<32x128xf32>
    %cst = arith.constant dense<0.000000e+00> : vector<256x128xf32>
    %2 = tpu.matmul %0, %1, %cst {dimension_numbers = #tpu.dot_dimension_numbers<[1], [0], [0], [1], [0, 0, 1, 1], [], []>} : vector<256x32xf32>, vector<32x128xf32>, vector<256x128xf32> -> vector<256x128xf32>
    %c0_3 = arith.constant 0 : index
    %c0_4 = arith.constant 0 : index
    %3 = vector.load %arg3[%c0_3, %c0_4] : memref<1x128xf32, #tpu.memory_space<vmem>>, vector<1x128xf32>
    %4 = vector.broadcast %3 : vector<1x128xf32> to vector<256x128xf32>
    %5 = arith.addf %2, %4 : vector<256x128xf32>
    %cst_5 = arith.constant 0.000000e+00 : f32
    %6 = vector.broadcast %cst_5 : f32 to vector<256x128xf32>
    %7 = arith.maximumf %5, %6 : vector<256x128xf32>
    %c0_6 = arith.constant 0 : index
    %c0_7 = arith.constant 0 : index
    %8 = vector.load %arg4[%c0_6, %c0_7] : memref<128x32xf32, #tpu.memory_space<vmem>>, vector<128x32xf32>
    %cst_8 = arith.constant dense<0.000000e+00> : vector<256x32xf32>
    %9 = tpu.matmul %7, %8, %cst_8 {dimension_numbers = #tpu.dot_dimension_numbers<[1], [0], [0], [1], [0, 0, 1, 1], [], []>} : vector<256x128xf32>, vector<128x32xf32>, vector<256x32xf32> -> vector<256x32xf32>
    %c0_9 = arith.constant 0 : index
    %c0_10 = arith.constant 0 : index
    %10 = vector.load %arg5[%c0_9, %c0_10] : memref<1x32xf32, #tpu.memory_space<vmem>>, vector<1x32xf32>
    %11 = vector.broadcast %10 : vector<1x32xf32> to vector<256x32xf32>
    %12 = arith.addf %9, %11 : vector<256x32xf32>
    %13 = arith.addf %12, %0 : vector<256x32xf32>
    %c0_11 = arith.constant 0 : index
    %c0_12 = arith.constant 0 : index
    %14 = vector.load %arg6[%c0_11, %c0_12] : memref<256x32xf32, #tpu.memory_space<vmem>>, vector<256x32xf32>
    tpu.vector_store %arg6[%c0_11, %c0_12], %13 {strides = array<i32>} : memref<256x32xf32, #tpu.memory_space<vmem>>, vector<256x32xf32>,
    return
  }
  func.func @transform_0(%arg0: i32) -> (i32, i32) {
    %c0_i32 = arith.constant 0 : i32
    %c0_i32_0 = arith.constant 0 : i32
    return %arg0, %c0_i32 : i32, i32
  }
  func.func @transform_1(%arg0: i32) -> (i32, i32) {
    %c0_i32 = arith.constant 0 : i32
    %c0_i32_0 = arith.constant 0 : i32
    %c0_i32_1 = arith.constant 0 : i32
    return %c0_i32, %c0_i32_0 : i32, i32
  }
  func.func @transform_2(%arg0: i32) -> (i32, i32) {
    %c0_i32 = arith.constant 0 : i32
    %c0_i32_0 = arith.constant 0 : i32
    %c0_i32_1 = arith.constant 0 : i32
    return %c0_i32, %c0_i32_0 : i32, i32
  }
  func.func @transform_3(%arg0: i32) -> (i32, i32) {
    %c0_i32 = arith.constant 0 : i32
    %c0_i32_0 = arith.constant 0 : i32
    %c0_i32_1 = arith.constant 0 : i32
    return %c0_i32, %c0_i32_0 : i32, i32
  }
  func.func @transform_4(%arg0: i32) -> (i32, i32) {
    %c0_i32 = arith.constant 0 : i32
    %c0_i32_0 = arith.constant 0 : i32
    %c0_i32_1 = arith.constant 0 : i32
    return %c0_i32, %c0_i32_0 : i32, i32
  }
  func.func @transform_5(%arg0: i32) -> (i32, i32) {
    %c0_i32 = arith.constant 0 : i32
    %c0_i32_0 = arith.constant 0 : i32
    return %arg0, %c0_i32 : i32, i32
  }
}

</mosaic_0001>

<bundles_post_ra>
// kernel: classic_feed_forward.1
= control target key start
LH: loop header
LB: loop body
LE: loop exit
PB: predicated region body
PF: predicated region fallthrough
CT: control target
= control target key end

     0   :  { %vm60_vm0 = vcmask 261120   ;;  %s1121_s1 = inlined_call_operand.vmem [shape: f32[32,128], index: 1, kind: input, shape index: {}]   ;;  %s1122_s0 = inlined_call_operand.vmem [shape: f32[256,32], index: 0, kind: input, shape index: {}]   ;;  %s1123_s2 = inlined_call_operand.vmem [shape: f32[1,128], index: 2, kind: input, shape index: {}]   ;;  %s1124_s3 = inlined_call_operand.vmem [shape: f32[128,32], index: 3, kind: input, shape index: {}]   ;;  %s1125_s4 = inlined_call_operand.vmem [shape: f32[1,32], index: 4, kind: input, shape index: {}]   ;;  %s1126_s5 = inlined_call_operand.vmem [shape: f32[256,32], index: 5, kind: output, shape index: {}]  }
   0x1   :  { %v55_v0 = vld [vmem:[%s1121_s1 + $0x18] sm:$0xff]  ;;  %v54_v1 = vld [vmem:[%s1121_s1 + $0x10] sm:$0xff]  ;;  %v53_v2 = vld [vmem:[%s1121_s1 + $0x8] sm:$0xff] }
   0x2   :  { %169 = vmatpush.msra.mxu0 %v55_v0  ;;  %535 = vmatpush.msra.mxu3 %v55_v0  ;;  %v52_v3 = vld [vmem:[%s1121_s1] sm:$0xff]  ;;  %v625_v5 = vld [vmem:[%s1122_s0 + $0x8] sm:$0xff]  ;;  %v632_v6 = vld [vmem:[%s1122_s0 + $0x10] sm:$0xff] }
   0x3   :  { %v618_v4 = vld [vmem:[%s1122_s0] sm:$0xff]  ;;  %v639_v7 = vld [vmem:[%s1122_s0 + $0x18] sm:$0xff]  ;;  %v653_v9 = vld [vmem:[%s1122_s0 + $0x28] sm:$0xff] }
   0x4   :  { %170 = vmatpush.msra.mxu0 %v54_v1  ;;  %536 = vmatpush.msra.mxu3 %v54_v1  ;;  %v646_v8 = vld [vmem:[%s1122_s0 + $0x20] sm:$0xff]  ;;  %v660_v10 = vld [vmem:[%s1122_s0 + $0x30] sm:$0xff]  ;;  %v667_v11 = vld [vmem:[%s1122_s0 + $0x38] sm:$0xff] }
   0x5   :  { %v674_v12 = vld [vmem:[%s1122_s0 + $0x40] sm:$0xff]  ;;  %v317_v13 = vld [vmem:[%s1124_s3 + $0x78] sm:$0xff]  ;;  %v316_v14 = vld [vmem:[%s1124_s3 + $0x70] sm:$0xff] }
   0x6   :  { %171 = vmatpush.msra.mxu0 %v53_v2  ;;  %537 = vmatpush.msra.mxu3 %v53_v2  ;;  %v315_v15 = vld [vmem:[%s1124_s3 + $0x68] sm:$0xff]  ;;  %v314_v17 = vld [vmem:[%s1124_s3 + $0x60] sm:$0xff]  ;;  %v313_v18 = vld [vmem:[%s1124_s3 + $0x58] sm:$0xff] }
   0x7   :  { %322 = vmatpush.msra.mxu1 %v317_v13  ;;  %539 = vmatpush.msra.mxu2 %v317_v13  ;;  %v690_v16 = vld [vmem:[%s1122_s0 + $0x48] sm:$0xff]  ;;  %v312_v19 = vld [vmem:[%s1124_s3 + $0x50] sm:$0xff]  ;;  %v310_v22 = vld [vmem:[%s1124_s3 + $0x40] sm:$0xff] }
   0x8   :  { %172 = vmatpush.msra.mxu0 %v52_v3  ;;  %538 = vmatpush.msra.mxu3 %v52_v3  ;;  %v311_v20 = vld [vmem:[%s1124_s3 + $0x48] sm:$0xff]  ;;  %v709_v21 = vld [vmem:[%s1122_s0 + $0x50] sm:$0xff]  ;;  %v309_v23 = vld [vmem:[%s1124_s3 + $0x38] sm:$0xff] }
   0x9   :  { %503 = vmatmul.msk.f32.vlgmr.msra.gmra.mxu0 %vm60_vm0, %v618_v4  ;;  %323 = vmatpush.msra.mxu1 %v316_v14  ;;  %v308_v24 = vld [vmem:[%s1124_s3 + $0x30] sm:$0xff]  ;;  %v307_v25 = vld [vmem:[%s1124_s3 + $0x28] sm:$0xff]  ;;  %v728_v26 = vld [vmem:[%s1122_s0 + $0x58] sm:$0xff] }
   0xa   :  { %540 = vmatpush.msrb.mxu3 %v317_v13  ;;  %541 = vmatpush.msra.mxu2 %v316_v14  ;;  %v306_v27 = vld [vmem:[%s1124_s3 + $0x20] sm:$0xff]  ;;  %v738_v28 = vld [vmem:[%s1122_s0 + $0x90] sm:$0xff]  ;;  %v305_v29 = vld [vmem:[%s1124_s3 + $0x18] sm:$0xff] }
   0xb   :  { %324 = vmatpush.msra.mxu1 %v315_v15  ;;  %521 = vmatmul.msk.f32.vlgmr.msra.gmra.mxu3 %vm60_vm0, %v738_v28  ;;  %v304_v30 = vld [vmem:[%s1124_s3 + $0x10] sm:$0xff]  ;;  %v751_v31 = vld [vmem:[%s1122_s0 + $0x60] sm:$0xff]  ;;  %v303_v32 = vld [vmem:[%s1124_s3 + $0x8] sm:$0xff] }
   0xc   :  { %542 = vmatpush.msrb.mxu3 %v316_v14  ;;  %543 = vmatpush.msra.mxu2 %v315_v15  ;;  %v302_v33 = vld [vmem:[%s1124_s3] sm:$0xff]  ;;  %v764_v34 = vld [vmem:[%s1122_s0 + $0x98] sm:$0xff]  ;;  %v771_v35 = vld [vmem:[%s1122_s0 + $0x68] sm:$0xff] }
   0xd   :  { %325 = vmatpush.msra.mxu1 %v314_v17  ;;  %v778_v36 = vld [vmem:[%s1122_s0 + $0xa0] sm:$0xff]  ;;  %v785_v37 = vld [vmem:[%s1122_s0 + $0x70] sm:$0xff]  ;;  %v792_v38 = vld [vmem:[%s1122_s0 + $0xa8] sm:$0xff] }
   0xe   :  { %544 = vmatpush.msrb.mxu3 %v315_v15  ;;  %545 = vmatpush.msra.mxu2 %v314_v17  ;;  %v799_v39 = vld [vmem:[%s1122_s0 + $0x78] sm:$0xff]  ;;  %v806_v40 = vld [vmem:[%s1122_s0 + $0xb0] sm:$0xff]  ;;  %v813_v41 = vld [vmem:[%s1123_s2] ss:$0 sm:$0xff] }
   0xf   :  { %326 = vmatpush.msra.mxu1 %v313_v18  ;;  %v818_v43 = vld [vmem:[%s1122_s0 + $0x80] sm:$0xff]  ;;  %v826_v46 = vld [vmem:[%s1122_s0 + $0xb8] sm:$0xff]  ;;  %v833_v48 = vld [vmem:[%s1122_s0 + $0x88] sm:$0xff] }
  0x10   :  { %546 = vmatpush.msrb.mxu3 %v314_v17  ;;  %547 = vmatpush.msra.mxu2 %v313_v18  ;;  %v841_v51 = vld [vmem:[%s1122_s0 + $0xc0] sm:$0xff]  ;;  %v849_v55 = vld [vmem:[%s1122_s0 + $0xc8] sm:$0xff]  ;;  %v857_v59 = vld [vmem:[%s1122_s0 + $0xd0] sm:$0xff] }
  0x11   :  { %504 = vmatmul.msk.f32.gmra.mxu0 %vm60_vm0, %v625_v5  ;;  %327 = vmatpush.msra.mxu1 %v312_v19  ;;  %v865_v63 = vld [vmem:[%s1122_s0 + $0xd8] sm:$0xff]  ;;  %v873_v3 = vld [vmem:[%s1122_s0 + $0xe0] sm:$0xff]  ;;  %v881_v17 = vld [vmem:[%s1122_s0 + $0xe8] sm:$0xff] }
  0x12   :  { %548 = vmatpush.msrb.mxu3 %v313_v18  ;;  %549 = vmatpush.msra.mxu2 %v312_v19 }
  0x13   :  { %328 = vmatpush.msra.mxu1 %v311_v20  ;;  %522 = vmatmul.msk.f32.gmra.mxu3 %vm60_vm0, %v764_v34 }
  0x14   :  { %550 = vmatpush.msrb.mxu3 %v312_v19  ;;  %551 = vmatpush.msra.mxu2 %v311_v20 }
  0x15   :  { %329 = vmatpush.msra.mxu1 %v310_v22 }
  0x16   :  { %552 = vmatpush.msrb.mxu3 %v311_v20  ;;  %553 = vmatpush.msra.mxu2 %v310_v22 }
  0x17   :  { %330 = vmatpush.msra.mxu1 %v309_v23 }
  0x18   :  { %554 = vmatpush.msrb.mxu3 %v310_v22  ;;  %555 = vmatpush.msra.mxu2 %v309_v23  ;;  %v889_v22 = vld [vmem:[%s1122_s0 + $0xf0] sm:$0xff] }
  0x19   :  { %505 = vmatmul.msk.f32.gmra.mxu0 %vm60_vm0, %v632_v6  ;;  %331 = vmatpush.msra.mxu1 %v308_v24 }
  0x1a   :  { %556 = vmatpush.msrb.mxu3 %v309_v23  ;;  %557 = vmatpush.msra.mxu2 %v308_v24 }
  0x1b   :  { %332 = vmatpush.msra.mxu1 %v307_v25  ;;  %523 = vmatmul.msk.f32.gmra.mxu3 %vm60_vm0, %v778_v36 }
  0x1c   :  { %558 = vmatpush.msrb.mxu3 %v308_v24  ;;  %559 = vmatpush.msra.mxu2 %v307_v25 }
  0x1d   :  { %333 = vmatpush.msra.mxu1 %v306_v27 }
  0x1e   :  { %560 = vmatpush.msrb.mxu3 %v307_v25  ;;  %561 = vmatpush.msra.mxu2 %v306_v27 }
  0x1f   :  { %334 = vmatpush.msra.mxu1 %v305_v29 }
  0x20   :  { %562 = vmatpush.msrb.mxu3 %v306_v27  ;;  %563 = vmatpush.msra.mxu2 %v305_v29  ;;  %v897_v27 = vld [vmem:[%s1122_s0 + $0xf8] sm:$0xff] }
  0x21   :  { %506 = vmatmul.msk.f32.gmra.mxu0 %vm60_vm0, %v639_v7  ;;  %335 = vmatpush.msra.mxu1 %v304_v30 }
  0x22   :  { %564 = vmatpush.msrb.mxu3 %v305_v29  ;;  %565 = vmatpush.msra.mxu2 %v304_v30 }
  0x23   :  { %336 = vmatpush.msra.mxu1 %v303_v32  ;;  %524 = vmatmul.msk.f32.gmra.mxu3 %vm60_vm0, %v792_v38 }
  0x24   :  { %566 = vmatpush.msrb.mxu3 %v304_v30  ;;  %567 = vmatpush.msra.mxu2 %v303_v32 }
  0x25   :  { %337 = vmatpush.msra.mxu1 %v302_v33 }
  0x26   :  { %569 = vmatpush.msra.mxu2 %v302_v33  ;;  %568 = vmatpush.msrb.mxu3 %v303_v32 }
  0x28   :  { %570 = vmatpush.msrb.mxu3 %v302_v33 }
  0x29   :  { %507 = vmatmul.msk.f32.gmra.mxu0 %vm60_vm0, %v646_v8 }
  0x2b   :  { %525 = vmatmul.msk.f32.gmra.mxu3 %vm60_vm0, %v806_v40 }
  0x31   :  { %508 = vmatmul.msk.f32.gmra.mxu0 %vm60_vm0, %v653_v9 }
  0x33   :  { %526 = vmatmul.msk.f32.gmra.mxu3 %vm60_vm0, %v826_v46 }
  0x39   :  { %509 = vmatmul.msk.f32.gmra.mxu0 %vm60_vm0, %v660_v10 }
  0x3b   :  { %527 = vmatmul.msk.f32.gmra.mxu3 %vm60_vm0, %v841_v51 }
  0x41   :  { %510 = vmatmul.msk.f32.gmra.mxu0 %vm60_vm0, %v667_v11 }
  0x43   :  { %528 = vmatmul.msk.f32.gmra.mxu3 %vm60_vm0, %v849_v55 }
  0x49   :  { %511 = vmatmul.msk.f32.gmra.mxu0 %vm60_vm0, %v674_v12 }
  0x4b   :  { %529 = vmatmul.msk.f32.gmra.mxu3 %vm60_vm0, %v857_v59 }
  0x51   :  { %512 = vmatmul.msk.f32.gmra.mxu0 %vm60_vm0, %v690_v16 }
  0x53   :  { %530 = vmatmul.msk.f32.gmra.mxu3 %vm60_vm0, %v865_v63 }
  0x59   :  { %513 = vmatmul.msk.f32.gmra.mxu0 %vm60_vm0, %v709_v21 }
  0x5b   :  { %531 = vmatmul.msk.f32.gmra.mxu3 %vm60_vm0, %v873_v3 }
  0x61   :  { %514 = vmatmul.msk.f32.gmra.mxu0 %vm60_vm0, %v728_v26 }
  0x63   :  { %532 = vmatmul.msk.f32.gmra.mxu3 %vm60_vm0, %v881_v17 }
  0x69   :  { %515 = vmatmul.msk.f32.gmra.mxu0 %vm60_vm0, %v751_v31 }
  0x6b   :  { %533 = vmatmul.msk.f32.gmra.mxu3 %vm60_vm0, %v889_v22 }
  0x71   :  { %516 = vmatmul.msk.f32.gmra.mxu0 %vm60_vm0, %v771_v35 }
  0x73   :  { %534 = vmatmul.msk.f32.gmra.mxu3 %vm60_vm0, %v897_v27 }
  0x79   :  { %517 = vmatmul.msk.f32.gmra.mxu0 %vm60_vm0, %v785_v37 }
  0x81   :  { %518 = vmatmul.msk.f32.gmra.mxu0 %vm60_vm0, %v799_v39 }
  0x86   :  { %v174_v42 = vpop.f32.mrf.mxu0 }
  0x87   :  { %v175_v44 = vadd.f32 %v813_v41, %v174_v42 }
  0x89   :  { %v270_v45 = vmax.f32 %v175_v44, 0.0  ;;  %519 = vmatmul.msk.f32.gmra.mxu0 %vm60_vm0, %v818_v43 }
  0x8b   :  { %338 = vmatmul.f32.vlgmr.msra.gmra.mxu1 %v270_v45 }
  0x8e   :  { %v177_v47 = vpop.f32.mrf.mxu0 }
  0x8f   :  { %v178_v49 = vadd.f32 %v813_v41, %v177_v47 }
  0x91   :  { %v271_v50 = vmax.f32 %v178_v49, 0.0  ;;  %520 = vmatmul.msk.f32.gmra.mxu0 %vm60_vm0, %v833_v48 }
  0x93   :  { %341 = vmatmul.f32.gmra.mxu1 %v271_v50 }
  0x96   :  { %v180_v52 = vpop.f32.mrf.mxu0 }
  0x97   :  { %v181_v53 = vadd.f32 %v813_v41, %v180_v52  ;;  %v228_v52 = vpop.f32.mrf.mxu3 }
  0x99   :  { %v272_v54 = vmax.f32 %v181_v53, 0.0 }
  0x9b   :  { %344 = vmatmul.f32.gmra.mxu1 %v272_v54 }
  0x9e   :  { %v183_v56 = vpop.f32.mrf.mxu0 }
  0x9f   :  { %v184_v57 = vadd.f32 %v813_v41, %v183_v56 }
  0xa1   :  { %v273_v58 = vmax.f32 %v184_v57, 0.0  ;;  %v231_v57 = vpop.f32.mrf.mxu3 }
  0xa3   :  { %347 = vmatmul.f32.gmra.mxu1 %v273_v58 }
  0xa6   :  { %v186_v60 = vpop.f32.mrf.mxu0 }
  0xa7   :  { %v187_v61 = vadd.f32 %v813_v41, %v186_v60 }
  0xa9   :  { %v274_v62 = vmax.f32 %v187_v61, 0.0 }
  0xab   :  { %350 = vmatmul.f32.gmra.mxu1 %v274_v62  ;;  %v234_v62 = vpop.f32.mrf.mxu3 }
  0xae   :  { %v189_v0 = vpop.f32.mrf.mxu0 }
  0xaf   :  { %v190_v1 = vadd.f32 %v813_v41, %v189_v0 }
  0xb1   :  { %v275_v2 = vmax.f32 %v190_v1, 0.0 }
  0xb3   :  { %353 = vmatmul.f32.gmra.mxu1 %v275_v2 }
  0xb6   :  { %v192_v13 = vpop.f32.mrf.mxu0 }
  0xb7   :  { %v193_v14 = vadd.f32 %v813_v41, %v192_v13  ;;  %v237_v13 = vpop.f32.mrf.mxu3 }
  0xb9   :  { %v276_v15 = vmax.f32 %v193_v14, 0.0 }
  0xbb   :  { %356 = vmatmul.f32.gmra.mxu1 %v276_v15 }
  0xbe   :  { %v195_v18 = vpop.f32.mrf.mxu0 }
  0xbf   :  { %v196_v19 = vadd.f32 %v813_v41, %v195_v18  ;;  %v911_v18 = vld [vmem:[%s1125_s4] ss:$0 sm:$0xff] }
  0xc1   :  { %v277_v20 = vmax.f32 %v196_v19, 0.0 }
  0xc3   :  { %359 = vmatmul.f32.gmra.mxu1 %v277_v20  ;;  %v240_v20 = vpop.f32.mrf.mxu3 }
  0xc6   :  { %v198_v23 = vpop.f32.mrf.mxu0 }
  0xc7   :  { %v199_v24 = vadd.f32 %v813_v41, %v198_v23 }
  0xc9   :  { %v278_v25 = vmax.f32 %v199_v24, 0.0 }
  0xcb   :  { %362 = vmatmul.f32.gmra.mxu1 %v278_v25 }
  0xce   :  { %v201_v29 = vpop.f32.mrf.mxu0 }
  0xcf   :  { %v202_v30 = vadd.f32 %v813_v41, %v201_v29 }
  0xd1   :  { %v279_v32 = vmax.f32 %v202_v30, 0.0 }
  0xd3   :  { %365 = vmatmul.f32.gmra.mxu1 %v279_v32 }
  0xd6   :  { %v204_v33 = vpop.f32.mrf.mxu0 }
  0xd7   :  { %v205_v42 = vadd.f32 %v813_v41, %v204_v33  ;;  %v243_v33 = vpop.f32.mrf.mxu3 }
  0xd9   :  { %v280_v44 = vmax.f32 %v205_v42, 0.0 }
  0xdb   :  { %368 = vmatmul.f32.gmra.mxu1 %v280_v44 }
  0xde   :  { %v207_v45 = vpop.f32.mrf.mxu0 }
  0xdf   :  { %v208_v47 = vadd.f32 %v813_v41, %v207_v45 }
  0xe1   :  { %v281_v49 = vmax.f32 %v208_v47, 0.0 }
  0xe3   :  { %371 = vmatmul.f32.gmra.mxu1 %v281_v49 }
  0xe6   :  { %v210_v50 = vpop.f32.mrf.mxu0 }
  0xe7   :  { %v211_v53 = vadd.f32 %v813_v41, %v210_v50  ;;  %v229_v50 = vadd.f32 %v813_v41, %v228_v52 }
  0xe9   :  { %v282_v54 = vmax.f32 %v211_v53, 0.0 }
  0xeb   :  { %374 = vmatmul.f32.gmra.mxu1 %v282_v54  ;;  %v288_v54 = vmax.f32 %v229_v50, 0.0 }
  0xee   :  { %v213_v56 = vpop.f32.mrf.mxu0 }
  0xef   :  { %v214_v58 = vadd.f32 %v813_v41, %v213_v56 }
  0xf1   :  { %v283_v60 = vmax.f32 %v214_v58, 0.0 }
  0xf3   :  { %377 = vmatmul.f32.gmra.mxu1 %v283_v60  ;;  %v232_v60 = vadd.f32 %v813_v41, %v231_v57 }
  0xf6   :  { %v216_v61 = vpop.f32.mrf.mxu0 }
  0xf7   :  { %v217_v0 = vadd.f32 %v813_v41, %v216_v61  ;;  %v289_v61 = vmax.f32 %v232_v60, 0.0 }
  0xf9   :  { %v284_v1 = vmax.f32 %v217_v0, 0.0 }
  0xfb   :  { %380 = vmatmul.f32.gmra.mxu1 %v284_v1 }
  0xfe   :  { %v219_v2 = vpop.f32.mrf.mxu0 }
  0xff   :  { %v220_v14 = vadd.f32 %v813_v41, %v219_v2  ;;  %v235_v2 = vadd.f32 %v813_v41, %v234_v62 }
 0x101   :  { %v285_v15 = vmax.f32 %v220_v14, 0.0  ;;  %v290_v14 = vmax.f32 %v235_v2, 0.0 }
 0x103   :  { %383 = vmatmul.f32.vlgmr.msra.gmra.mxu2 %v285_v15 }
 0x106   :  { %v222_v19 = vpop.f32.mrf.mxu0 }
 0x107   :  { %v223_v23 = vadd.f32 %v813_v41, %v222_v19 }
 0x108   :  { %v339_v24 = vpop.f32.mrf.mxu1 }
 0x109   :  { %v286_v25 = vmax.f32 %v223_v23, 0.0  ;;  %v340_v29 = vadd.f32 %v911_v18, %v339_v24  ;;  %v238_v23 = vadd.f32 %v813_v41, %v237_v13 }
 0x10b   :  { %v435_v30 = vadd.f32 %v340_v29, %v618_v4  ;;  %386 = vmatmul.f32.gmra.mxu2 %v286_v25  ;;  %v246_v4 = vpop.f32.mrf.mxu3  ;;  %v291_v24 = vmax.f32 %v238_v23, 0.0 }
 0x10d   :  { %467 = vst.msk [vmem:[%s1126_s5] sm:$0xff] %vm60_vm0, %v435_v30  ;;  %v241_v30 = vadd.f32 %v813_v41, %v240_v20 }
 0x10e   :  { %v225_v32 = vpop.f32.mrf.mxu0 }
 0x10f   :  { %v226_v42 = vadd.f32 %v813_v41, %v225_v32  ;;  %v292_v32 = vmax.f32 %v241_v30, 0.0 }
 0x110   :  { %v342_v44 = vpop.f32.mrf.mxu1 }
 0x111   :  { %v287_v45 = vmax.f32 %v226_v42, 0.0  ;;  %v343_v47 = vadd.f32 %v911_v18, %v342_v44 }
 0x113   :  { %v436_v49 = vadd.f32 %v343_v47, %v625_v5  ;;  %389 = vmatmul.f32.gmra.mxu2 %v287_v45  ;;  %v249_v5 = vpop.f32.mrf.mxu3  ;;  %v244_v45 = vadd.f32 %v813_v41, %v243_v33 }
 0x115   :  { %468 = vst.msk [vmem:[%s1126_s5 + $0x8] sm:$0xff] %vm60_vm0, %v436_v49  ;;  %v293_v47 = vmax.f32 %v244_v45, 0.0 }
 0x118   :  { %v345_v53 = vpop.f32.mrf.mxu1 }
 0x119   :  { %v346_v56 = vadd.f32 %v911_v18, %v345_v53  ;;  %v247_v53 = vadd.f32 %v813_v41, %v246_v4 }
 0x11b   :  { %v437_v58 = vadd.f32 %v346_v56, %v632_v6  ;;  %392 = vmatmul.f32.gmra.mxu2 %v288_v54  ;;  %v252_v6 = vpop.f32.mrf.mxu3  ;;  %v294_v56 = vmax.f32 %v247_v53, 0.0 }
 0x11d   :  { %469 = vst.msk [vmem:[%s1126_s5 + $0x10] sm:$0xff] %vm60_vm0, %v437_v58 }
 0x120   :  { %v348_v52 = vpop.f32.mrf.mxu1 }
 0x121   :  { %v349_v0 = vadd.f32 %v911_v18, %v348_v52 }
 0x123   :  { %v438_v1 = vadd.f32 %v349_v0, %v639_v7  ;;  %395 = vmatmul.f32.gmra.mxu2 %v289_v61  ;;  %v255_v7 = vpop.f32.mrf.mxu3 }
 0x125   :  { %470 = vst.msk [vmem:[%s1126_s5 + $0x18] sm:$0xff] %vm60_vm0, %v438_v1 }
 0x128   :  { %v351_v57 = vpop.f32.mrf.mxu1 }
 0x129   :  { %v352_v15 = vadd.f32 %v911_v18, %v351_v57 }
 0x12b   :  { %v439_v19 = vadd.f32 %v352_v15, %v646_v8  ;;  %398 = vmatmul.f32.gmra.mxu2 %v290_v14  ;;  %v258_v8 = vpop.f32.mrf.mxu3 }
 0x12d   :  { %471 = vst.msk [vmem:[%s1126_s5 + $0x20] sm:$0xff] %vm60_vm0, %v439_v19 }
 0x130   :  { %v354_v62 = vpop.f32.mrf.mxu1 }
 0x131   :  { %v355_v25 = vadd.f32 %v911_v18, %v354_v62  ;;  %v256_v62 = vadd.f32 %v813_v41, %v255_v7 }
 0x133   :  { %v440_v29 = vadd.f32 %v355_v25, %v653_v9  ;;  %401 = vmatmul.f32.gmra.mxu2 %v291_v24  ;;  %v261_v9 = vpop.f32.mrf.mxu3 }
 0x135   :  { %472 = vst.msk [vmem:[%s1126_s5 + $0x28] sm:$0xff] %vm60_vm0, %v440_v29  ;;  %v259_v29 = vadd.f32 %v813_v41, %v258_v8 }
 0x137   :  { %v298_v7 = vmax.f32 %v259_v29, 0.0 }
 0x138   :  { %v357_v13 = vpop.f32.mrf.mxu1 }
 0x139   :  { %v358_v42 = vadd.f32 %v911_v18, %v357_v13 }
 0x13b   :  { %v441_v44 = vadd.f32 %v358_v42, %v660_v10  ;;  %404 = vmatmul.f32.gmra.mxu2 %v292_v32  ;;  %v264_v10 = vpop.f32.mrf.mxu3  ;;  %v262_v32 = vadd.f32 %v813_v41, %v261_v9 }
 0x13c   :  { %v265_v33 = vadd.f32 %v813_v41, %v264_v10 }
 0x13d   :  { %473 = vst.msk [vmem:[%s1126_s5 + $0x30] sm:$0xff] %vm60_vm0, %v441_v44  ;;  %v299_v8 = vmax.f32 %v262_v32, 0.0 }
 0x13e   :  { %v300_v60 = vmax.f32 %v265_v33, 0.0 }
 0x140   :  { %v360_v20 = vpop.f32.mrf.mxu1  ;;  %428 = vmatmul.f32.vlgmr.msrb.gmra.mxu3 %v300_v60 }
 0x141   :  { %v361_v49 = vadd.f32 %v911_v18, %v360_v20 }
 0x143   :  { %v442_v50 = vadd.f32 %v361_v49, %v667_v11  ;;  %407 = vmatmul.f32.gmra.mxu2 %v293_v47  ;;  %v250_v11 = vadd.f32 %v813_v41, %v249_v5  ;;  %v267_v4 = vpop.f32.mrf.mxu3 }
 0x144   :  { %v268_v61 = vadd.f32 %v813_v41, %v267_v4 }
 0x145   :  { %474 = vst.msk [vmem:[%s1126_s5 + $0x38] sm:$0xff] %vm60_vm0, %v442_v50  ;;  %v295_v1 = vmax.f32 %v250_v11, 0.0 }
 0x146   :  { %v301_v57 = vmax.f32 %v268_v61, 0.0 }
 0x148   :  { %v363_v54 = vpop.f32.mrf.mxu1  ;;  %431 = vmatmul.f32.gmra.mxu3 %v301_v57 }
 0x149   :  { %v364_v58 = vadd.f32 %v911_v18, %v363_v54 }
 0x14b   :  { %v443_v52 = vadd.f32 %v364_v58, %v674_v12  ;;  %410 = vmatmul.f32.gmra.mxu2 %v294_v56  ;;  %v253_v12 = vadd.f32 %v813_v41, %v252_v6  ;;  %v297_v6 = vmax.f32 %v256_v62, 0.0 }
 0x14d   :  { %475 = vst.msk [vmem:[%s1126_s5 + $0x40] sm:$0xff] %vm60_vm0, %v443_v52  ;;  %v296_v15 = vmax.f32 %v253_v12, 0.0 }
 0x150   :  { %v366_v0 = vpop.f32.mrf.mxu1 }
 0x151   :  { %v367_v2 = vadd.f32 %v911_v18, %v366_v0 }
 0x153   :  { %v444_v14 = vadd.f32 %v367_v2, %v690_v16  ;;  %413 = vmatmul.f32.gmra.mxu2 %v295_v1 }
 0x155   :  { %476 = vst.msk [vmem:[%s1126_s5 + $0x48] sm:$0xff] %vm60_vm0, %v444_v14 }
 0x158   :  { %v369_v5 = vpop.f32.mrf.mxu1 }
 0x159   :  { %v370_v19 = vadd.f32 %v911_v18, %v369_v5 }
 0x15b   :  { %v445_v23 = vadd.f32 %v370_v19, %v709_v21  ;;  %416 = vmatmul.f32.gmra.mxu2 %v296_v15 }
 0x15d   :  { %477 = vst.msk [vmem:[%s1126_s5 + $0x50] sm:$0xff] %vm60_vm0, %v445_v23 }
 0x160   :  { %v372_v16 = vpop.f32.mrf.mxu1 }
 0x161   :  { %v373_v24 = vadd.f32 %v911_v18, %v372_v16 }
 0x163   :  { %v446_v25 = vadd.f32 %v373_v24, %v728_v26  ;;  %419 = vmatmul.f32.gmra.mxu2 %v297_v6 }
 0x165   :  { %478 = vst.msk [vmem:[%s1126_s5 + $0x58] sm:$0xff] %vm60_vm0, %v446_v25 }
 0x168   :  { %v375_v21 = vpop.f32.mrf.mxu1 }
 0x169   :  { %v376_v30 = vadd.f32 %v911_v18, %v375_v21 }
 0x16b   :  { %v447_v13 = vadd.f32 %v376_v30, %v751_v31  ;;  %422 = vmatmul.f32.gmra.mxu2 %v298_v7 }
 0x16d   :  { %479 = vst.msk [vmem:[%s1126_s5 + $0x60] sm:$0xff] %vm60_vm0, %v447_v13 }
 0x170   :  { %v378_v26 = vpop.f32.mrf.mxu1 }
 0x171   :  { %v379_v42 = vadd.f32 %v911_v18, %v378_v26 }
 0x173   :  { %v448_v44 = vadd.f32 %v379_v42, %v771_v35  ;;  %425 = vmatmul.f32.gmra.mxu2 %v299_v8 }
 0x175   :  { %480 = vst.msk [vmem:[%s1126_s5 + $0x68] sm:$0xff] %vm60_vm0, %v448_v44 }
 0x178   :  { %v381_v31 = vpop.f32.mrf.mxu1 }
 0x179   :  { %v382_v41 = vadd.f32 %v911_v18, %v381_v31 }
 0x17b   :  { %v449_v45 = vadd.f32 %v382_v41, %v785_v37 }
 0x17d   :  { %481 = vst.msk [vmem:[%s1126_s5 + $0x70] sm:$0xff] %vm60_vm0, %v449_v45 }
 0x186   :  { %v384_v9 = vpop.f32.mrf.mxu2 }
 0x187   :  { %v385_v20 = vadd.f32 %v911_v18, %v384_v9 }
 0x189   :  { %v450_v35 = vadd.f32 %v385_v20, %v799_v39 }
 0x18b   :  { %482 = vst.msk [vmem:[%s1126_s5 + $0x78] sm:$0xff] %vm60_vm0, %v450_v35 }
 0x18e   :  { %v387_v47 = vpop.f32.mrf.mxu2 }
 0x18f   :  { %v388_v49 = vadd.f32 %v911_v18, %v387_v47 }
 0x191   :  { %v451_v37 = vadd.f32 %v388_v49, %v818_v43 }
 0x193   :  { %483 = vst.msk [vmem:[%s1126_s5 + $0x80] sm:$0xff] %vm60_vm0, %v451_v37 }
 0x196   :  { %v390_v50 = vpop.f32.mrf.mxu2 }
 0x197   :  { %v391_v53 = vadd.f32 %v911_v18, %v390_v50 }
 0x199   :  { %v452_v39 = vadd.f32 %v391_v53, %v833_v48 }
 0x19b   :  { %484 = vst.msk [vmem:[%s1126_s5 + $0x88] sm:$0xff] %vm60_vm0, %v452_v39 }
 0x19e   :  { %v393_v10 = vpop.f32.mrf.mxu2 }
 0x19f   :  { %v394_v33 = vadd.f32 %v911_v18, %v393_v10 }
 0x1a1   :  { %v453_v43 = vadd.f32 %v394_v33, %v738_v28 }
 0x1a3   :  { %485 = vst.msk [vmem:[%s1126_s5 + $0x90] sm:$0xff] %vm60_vm0, %v453_v43 }
 0x1a6   :  { %v396_v54 = vpop.f32.mrf.mxu2 }
 0x1a7   :  { %v397_v56 = vadd.f32 %v911_v18, %v396_v54 }
 0x1a9   :  { %v454_v48 = vadd.f32 %v397_v56, %v764_v34 }
 0x1ab   :  { %486 = vst.msk [vmem:[%s1126_s5 + $0x98] sm:$0xff] %vm60_vm0, %v454_v48 }
 0x1ae   :  { %v399_v58 = vpop.f32.mrf.mxu2 }
 0x1af   :  { %v400_v60 = vadd.f32 %v911_v18, %v399_v58 }
 0x1b1   :  { %v455_v28 = vadd.f32 %v400_v60, %v778_v36 }
 0x1b3   :  { %487 = vst.msk [vmem:[%s1126_s5 + $0xa0] sm:$0xff] %vm60_vm0, %v455_v28 }
 0x1b6   :  { %v402_v52 = vpop.f32.mrf.mxu2 }
 0x1b7   :  { %v403_v11 = vadd.f32 %v911_v18, %v402_v52 }
 0x1b9   :  { %v456_v34 = vadd.f32 %v403_v11, %v792_v38 }
 0x1bb   :  { %488 = vst.msk [vmem:[%s1126_s5 + $0xa8] sm:$0xff] %vm60_vm0, %v456_v34 }
 0x1be   :  { %v405_v4 = vpop.f32.mrf.mxu2 }
 0x1bf   :  { %v406_v61 = vadd.f32 %v911_v18, %v405_v4 }
 0x1c1   :  { %v457_v36 = vadd.f32 %v406_v61, %v806_v40 }
 0x1c3   :  { %489 = vst.msk [vmem:[%s1126_s5 + $0xb0] sm:$0xff] %vm60_vm0, %v457_v36  ;;  %v429_v57 = vpop.f32.mrf.mxu3 }
 0x1c4   :  { %v430_v40 = vadd.f32 %v911_v18, %v429_v57 }
 0x1c6   :  { %v408_v0 = vpop.f32.mrf.mxu2  ;;  %v465_v5 = vadd.f32 %v430_v40, %v889_v22 }
 0x1c7   :  { %v409_v1 = vadd.f32 %v911_v18, %v408_v0 }
 0x1c8   :  { %497 = vst.msk [vmem:[%s1126_s5 + $0xf0] sm:$0xff] %vm60_vm0, %v465_v5 }
 0x1c9   :  { %v458_v38 = vadd.f32 %v409_v1, %v826_v46 }
 0x1cb   :  { %490 = vst.msk [vmem:[%s1126_s5 + $0xb8] sm:$0xff] %vm60_vm0, %v458_v38  ;;  %v432_v15 = vpop.f32.mrf.mxu3 }
 0x1cc   :  { %v433_v23 = vadd.f32 %v911_v18, %v432_v15 }
 0x1ce   :  { %v411_v2 = vpop.f32.mrf.mxu2  ;;  %v466_v22 = vadd.f32 %v433_v23, %v897_v27 }
 0x1cf   :  { %v412_v14 = vadd.f32 %v911_v18, %v411_v2 }
 0x1d0   :  { %498 = vst.msk [vmem:[%s1126_s5 + $0xf8] sm:$0xff] %vm60_vm0, %v466_v22 }
 0x1d1   :  { %v459_v12 = vadd.f32 %v412_v14, %v841_v51 }
 0x1d3   :  { %491 = vst.msk [vmem:[%s1126_s5 + $0xc0] sm:$0xff] %vm60_vm0, %v459_v12 }
 0x1d6   :  { %v414_v46 = vpop.f32.mrf.mxu2 }
 0x1d7   :  { %v415_v19 = vadd.f32 %v911_v18, %v414_v46 }
 0x1d9   :  { %v460_v51 = vadd.f32 %v415_v19, %v849_v55 }
 0x1db   :  { %492 = vst.msk [vmem:[%s1126_s5 + $0xc8] sm:$0xff] %vm60_vm0, %v460_v51 }
 0x1de   :  { %v417_v62 = vpop.f32.mrf.mxu2 }
 0x1df   :  { %v418_v16 = vadd.f32 %v911_v18, %v417_v62 }
 0x1e1   :  { %v461_v6 = vadd.f32 %v418_v16, %v857_v59 }
 0x1e3   :  { %493 = vst.msk [vmem:[%s1126_s5 + $0xd0] sm:$0xff] %vm60_vm0, %v461_v6 }
 0x1e6   :  { %v420_v55 = vpop.f32.mrf.mxu2 }
 0x1e7   :  { %v421_v27 = vadd.f32 %v911_v18, %v420_v55 }
 0x1e9   :  { %v462_v24 = vadd.f32 %v421_v27, %v865_v63 }
 0x1eb   :  { %494 = vst.msk [vmem:[%s1126_s5 + $0xd8] sm:$0xff] %vm60_vm0, %v462_v24 }
 0x1ee   :  { %v423_v25 = vpop.f32.mrf.mxu2 }
 0x1ef   :  { %v424_v29 = vadd.f32 %v911_v18, %v423_v25 }
 0x1f1   :  { %v463_v59 = vadd.f32 %v424_v29, %v873_v3 }
 0x1f3   :  { %495 = vst.msk [vmem:[%s1126_s5 + $0xe0] sm:$0xff] %vm60_vm0, %v463_v59 }
 0x1f6   :  { %v426_v21 = vpop.f32.mrf.mxu2 }
 0x1f7   :  { %v427_v7 = vadd.f32 %v911_v18, %v426_v21 }
 0x1f9   :  { %v464_v63 = vadd.f32 %v427_v7, %v881_v17 }
 0x1fb   :  { %496 = vst.msk [vmem:[%s1126_s5 + $0xe8] sm:$0xff] %vm60_vm0, %v464_v63 }

</bundles_post_ra>
